<compile_context>
chip_gen: v7x
topology: tpu7x:2x2x1
jax: 0.10.0
libtpu: 0.0.40
codegen_flags: <defaults>
</compile_context>

<pallas_src>
import jax
import jax.numpy as jnp
from jax.experimental import pallas as pl
from jax.experimental.pallas import tpu as pltpu


# ---------------------------------------------------------------------------
# Kernel
# ---------------------------------------------------------------------------
def _gpsa_kernel(x_ref, coef_ref, o_ref):
    """out = A*x + B'*sum_W(x) + D'*sum_H(x) + E'*sum_HW(x), per channel."""
    x = x_ref[...]                    # (1, tc, H, W), input dtype (f32 / bf16)

    a = coef_ref[0]                   # (tc, 1, 1) float32
    b = coef_ref[1]
    d = coef_ref[2]
    e = coef_ref[3]

    # Strip sums with f32 accumulation (reduction scales folded into coefs).
    s_w = jnp.sum(x, axis=-1, keepdims=True, dtype=jnp.float32)   # (1,tc,H,1)
    s_h = jnp.sum(x, axis=-2, keepdims=True, dtype=jnp.float32)   # (1,tc,1,W)
    s_hw = jnp.sum(s_w, axis=-2, keepdims=True)                   # (1,tc,1,1)

    # Compose broadcast terms on the small shapes first so the full (H, W)
    # tile is only touched three times (mul, add, add).
    col = b * s_w                     # (1, tc, H, 1)
    row = d * s_h + e * s_hw          # (1, tc, 1, W)
    out = a * x + col                 # bf16 x upcasts inside the fused mul
    out = out + row
    o_ref[...] = out.astype(o_ref.dtype)


# ---------------------------------------------------------------------------
# Tiling helpers
# ---------------------------------------------------------------------------
def _vmem_capacity_bytes():
    """Physical VMEM per TensorCore; conservative 64 MiB if the query fails."""
    try:
        cap = getattr(pltpu.get_tpu_info(), "vmem_capacity_bytes", None)
        if cap:
            return int(cap)
    except Exception:
        pass
    return 64 << 20


def _padded_plane_bytes(H, W, dtype):
    """VMEM bytes of one (H, W) plane after Mosaic (sublane, 128) tiling."""
    itemsize = jnp.dtype(dtype).itemsize
    sublane = 8 * max(1, 4 // itemsize)          # 8 f32, 16 bf16
    rows = -(-H // sublane) * sublane
    cols = -(-W // 128) * 128
    return rows * cols * itemsize


def _channel_cost_bytes(H, W, dtype):
    """Padded VMEM bytes per channel per grid step (all double buffers).

    2 x-input buffers + 2 output buffers + 2 coefficient buffers, where the
    (4, tc, 1, 1) coefficient block pads to one (8,128) f32 tile per channel
    per coefficient.
    """
    plane = _padded_plane_bytes(H, W, dtype)
    return 4 * plane + 2 * 4 * 4096


def _pick_channel_tile(N, C, H, W, dtype, budget_bytes):
    """Channels per block, sized against the padded double-buffered footprint."""
    chan_cost = _channel_cost_bytes(H, W, dtype)
    payload = H * W * jnp.dtype(dtype).itemsize

    tc = max(1, min(C, budget_bytes // chan_cost))

    # Megacore occupancy (v7x has 2 TCs): keep >= 4 total grid steps when that
    # does not push the useful per-step payload below ~1 MiB.
    steps = N * pl.cdiv(C, tc)
    if steps < 4:
        cblocks_wanted = pl.cdiv(4, N)
        tc_occ = max(1, pl.cdiv(C, cblocks_wanted))
        tc_floor = max(1, (1 << 20) // max(payload, 1))
        tc = min(tc, max(tc_occ, min(tc_floor, tc)))

    # Prefer a nearby exact divisor of C (avoids a ragged, partially masked
    # last block) if one exists within 25% of the budgeted size.
    for d in range(tc, max((3 * tc) // 4, 1) - 1, -1):
        if C % d == 0:
            return d, chan_cost
    return tc, chan_cost


# ---------------------------------------------------------------------------
# Wrapper
# ---------------------------------------------------------------------------
def global_pool_strip_attention(x, params, *, channel_tile=None):
    """Forward pass of GlobalPoolStripAttention.

    x:      (N, C, H, W) array (float32 or bfloat16), NCHW like the module.
    params: dict of per-channel (C, 1, 1) arrays: vert_low, vert_high,
            hori_low, hori_high, gamma, beta (PyTorch parameter shapes).
    """
    N, C, H, W = x.shape

    def as_c(name):
        return jnp.asarray(params[name], jnp.float32).reshape(C)

    vl, vh = as_c("vert_low"), as_c("vert_high")
    hl, hh = as_c("hori_low"), as_c("hori_high")
    gamma, beta = as_c("gamma"), as_c("beta")

    # Exact fusion of the two affine strip stages; 1/W, 1/H, 1/(H*W) folded.
    vh1, hh1 = vh + 1.0, hh + 1.0
    dvl, dhl = vl - vh1, hl - hh1
    A = beta + gamma * vh1 * hh1
    B = gamma * vh1 * dhl * (1.0 / W)
    D = gamma * dvl * hh1 * (1.0 / H)
    E = gamma * dvl * dhl * (1.0 / (H * W))
    coef = jnp.stack([A, B, D, E]).reshape(4, C, 1, 1)

    cap = _vmem_capacity_bytes()
    budget = min(cap // 2, 64 << 20)

    if channel_tile is not None:
        tc = max(1, min(int(channel_tile), C))
        chan_cost = _channel_cost_bytes(H, W, x.dtype)
    else:
        tc, chan_cost = _pick_channel_tile(N, C, H, W, x.dtype, budget)

    footprint = chan_cost * tc
    if footprint + (8 << 20) > cap:
        # A single (H, W) plane no longer fits VMEM (or a forced tile is too
        # big): fall back to XLA on the same fused formula.
        # TODO(synk): H-tiled two-pass (reduce, apply) Pallas kernel instead.
        xf = x.astype(jnp.float32)
        s_w = jnp.sum(xf, axis=-1, keepdims=True)
        s_h = jnp.sum(xf, axis=-2, keepdims=True)
        s_hw = jnp.sum(s_w, axis=-2, keepdims=True)
        bc = lambda v: v.reshape(1, C, 1, 1)
        out = bc(A) * xf + bc(B) * s_w + bc(D) * s_h + bc(E) * s_hw
        return out.astype(x.dtype)

    num_c_blocks = pl.cdiv(C, tc)
    vmem_limit = int(min(cap, max(footprint + (8 << 20), 16 << 20)))

    x_spec = pl.BlockSpec((1, tc, H, W), lambda n, c: (n, c, 0, 0))
    coef_spec = pl.BlockSpec((4, tc, 1, 1), lambda n, c: (0, c, 0, 0))

    return pl.pallas_call(
        _gpsa_kernel,
        out_shape=jax.ShapeDtypeStruct((N, C, H, W), x.dtype),
        grid=(N, num_c_blocks),
        in_specs=[x_spec, coef_spec],
        out_specs=x_spec,
        compiler_params=pltpu.CompilerParams(
            dimension_semantics=("parallel", "parallel"),
            vmem_limit_bytes=vmem_limit),
    )(x, coef)


# ---------------------------------------------------------------------------
# Pure-JAX reference mirroring the PyTorch forward (unfused)
# ---------------------------------------------------------------------------
def _reference(x, params):
    C = x.shape[1]
    bc = lambda p: jnp.asarray(p, jnp.float32).reshape(1, C, 1, 1)
    xf = x.astype(jnp.float32)
    hori_l = jnp.mean(xf, axis=-1, keepdims=True)
    hori_h = xf - hori_l
    hori_out = bc(params["hori_low"]) * hori_l + (bc(params["hori_high"]) + 1.0) * hori_h
    vert_l = jnp.mean(hori_out, axis=-2, keepdims=True)
    vert_h = hori_out - vert_l
    vert_out = bc(params["vert_low"]) * vert_l + (bc(params["vert_high"]) + 1.0) * vert_h
    out = xf * bc(params["beta"]) + vert_out * bc(params["gamma"])
    return out.astype(x.dtype)


if __name__ == "__main__":
    def make_case(key, shape, dtype):
        kx, kp = jax.random.split(key)
        x = jax.random.normal(kx, shape, dtype=jnp.float32).astype(dtype)
        C = shape[1]
        names = ["vert_low", "vert_high", "hori_low", "hori_high", "gamma", "beta"]
        pkeys = jax.random.split(kp, len(names))
        params = {n: 0.1 * jax.random.normal(k, (C, 1, 1), dtype=jnp.float32)
                  for n, k in zip(names, pkeys)}
        params["beta"] = params["beta"] + 1.0   # torch init is ones
        return x, params

    # Case 1: canonical small NCHW shape.
    x, params = make_case(jax.random.PRNGKey(0), (2, 4, 16, 16), jnp.float32)
    out = jax.block_until_ready(global_pool_strip_attention(x, params))
    ref = jax.block_until_ready(_reference(x, params))
    assert out.shape == x.shape and out.dtype == x.dtype
    assert jnp.allclose(out, ref, atol=1e-5, rtol=1e-5), \
        float(jnp.max(jnp.abs(out - ref)))

    # Case 2: ragged channel tiling (tc=4 does not divide C=6), H not a
    # multiple of 8, W not a multiple of 128.
    x2, params2 = make_case(jax.random.PRNGKey(1), (1, 6, 13, 20), jnp.float32)
    out2 = jax.block_until_ready(
        global_pool_strip_attention(x2, params2, channel_tile=4))
    ref2 = _reference(x2, params2)
    assert jnp.allclose(out2, ref2, atol=1e-5, rtol=1e-5), \
        float(jnp.max(jnp.abs(out2 - ref2)))

    # Case 3: bfloat16 input (f32 accumulation inside the kernel).
    x3, params3 = make_case(jax.random.PRNGKey(2), (2, 8, 16, 16), jnp.bfloat16)
    out3 = jax.block_until_ready(global_pool_strip_attention(x3, params3))
    ref3 = _reference(x3, params3)
    assert out3.dtype == jnp.bfloat16
    d3 = jnp.max(jnp.abs(out3.astype(jnp.float32) - ref3.astype(jnp.float32)))
    assert jnp.allclose(out3.astype(jnp.float32), ref3.astype(jnp.float32),
                        atol=3e-2, rtol=3e-2), float(d3)

    print("KERNEL_OK")
</pallas_src>

<mosaic_0001>
module attributes {stable_mosaic.version = 11 : i64} {
  func.func @_gpsa_kernel(%arg0: i32, %arg1: i32, %arg2: memref<1x4x16x16xf32, #tpu.memory_space<vmem>>, %arg3: memref<4x4x1x1xf32, #tpu.memory_space<vmem>>, %arg4: memref<1x4x16x16xf32, #tpu.memory_space<vmem>>) attributes {dimension_semantics = [#tpu.dimension_semantics<parallel>, #tpu.dimension_semantics<parallel>], iteration_bounds = array<i64: 2, 1>, scalar_prefetch = 0 : i64, scratch_operands = 0 : i64, tpu.core_type = #tpu.core_type<tc>, window_params = [{transform_indices = @transform_0, window_bounds = array<i64: 1, 4, 16, 16>}, {transform_indices = @transform_1, window_bounds = array<i64: 4, 4, 1, 1>}, {transform_indices = @transform_2, window_bounds = array<i64: 1, 4, 16, 16>}]} {
    %c0 = arith.constant 0 : index
    %c0_0 = arith.constant 0 : index
    %c0_1 = arith.constant 0 : index
    %c0_2 = arith.constant 0 : index
    %0 = vector.load %arg2[%c0, %c0_0, %c0_1, %c0_2] : memref<1x4x16x16xf32, #tpu.memory_space<vmem>>, vector<1x4x16x16xf32>
    %c0_3 = arith.constant 0 : index
    %c0_4 = arith.constant 0 : index
    %c0_5 = arith.constant 0 : index
    %c0_6 = arith.constant 0 : index
    %1 = vector.load %arg3[%c0_3, %c0_4, %c0_5, %c0_6] : memref<4x4x1x1xf32, #tpu.memory_space<vmem>>, vector<1x4x1x1xf32>
    %2 = vector.shape_cast %1 : vector<1x4x1x1xf32> to vector<4x1x1xf32>
    %c1 = arith.constant 1 : index
    %c0_7 = arith.constant 0 : index
    %c0_8 = arith.constant 0 : index
    %c0_9 = arith.constant 0 : index
    %3 = vector.load %arg3[%c1, %c0_7, %c0_8, %c0_9] : memref<4x4x1x1xf32, #tpu.memory_space<vmem>>, vector<1x4x1x1xf32>
    %4 = vector.shape_cast %3 : vector<1x4x1x1xf32> to vector<4x1x1xf32>
    %c2 = arith.constant 2 : index
    %c0_10 = arith.constant 0 : index
    %c0_11 = arith.constant 0 : index
    %c0_12 = arith.constant 0 : index
    %5 = vector.load %arg3[%c2, %c0_10, %c0_11, %c0_12] : memref<4x4x1x1xf32, #tpu.memory_space<vmem>>, vector<1x4x1x1xf32>
    %6 = vector.shape_cast %5 : vector<1x4x1x1xf32> to vector<4x1x1xf32>
    %c3 = arith.constant 3 : index
    %c0_13 = arith.constant 0 : index
    %c0_14 = arith.constant 0 : index
    %c0_15 = arith.constant 0 : index
    %7 = vector.load %arg3[%c3, %c0_13, %c0_14, %c0_15] : memref<4x4x1x1xf32, #tpu.memory_space<vmem>>, vector<1x4x1x1xf32>
    %8 = vector.shape_cast %7 : vector<1x4x1x1xf32> to vector<4x1x1xf32>
    %cst = arith.constant dense<0.000000e+00> : vector<1x4x16xf32>
    %9 = vector.multi_reduction <add>, %0, %cst [3] : vector<1x4x16x16xf32> to vector<1x4x16xf32>
    %10 = vector.shape_cast %9 : vector<1x4x16xf32> to vector<1x4x16x1xf32>
    %cst_16 = arith.constant dense<0.000000e+00> : vector<1x4x16xf32>
    %11 = vector.multi_reduction <add>, %0, %cst_16 [2] : vector<1x4x16x16xf32> to vector<1x4x16xf32>
    %12 = vector.shape_cast %11 : vector<1x4x16xf32> to vector<1x4x1x16xf32>
    %cst_17 = arith.constant dense<0.000000e+00> : vector<1x4x1xf32>
    %13 = vector.multi_reduction <add>, %10, %cst_17 [2] : vector<1x4x16x1xf32> to vector<1x4x1xf32>
    %14 = vector.shape_cast %13 : vector<1x4x1xf32> to vector<1x4x1x1xf32>
    %15 = vector.shape_cast %4 : vector<4x1x1xf32> to vector<1x4x1x1xf32>
    %16 = vector.broadcast %15 : vector<1x4x1x1xf32> to vector<1x4x16x1xf32>
    %17 = arith.mulf %16, %10 : vector<1x4x16x1xf32>
    %18 = vector.shape_cast %6 : vector<4x1x1xf32> to vector<1x4x1x1xf32>
    %19 = vector.broadcast %18 : vector<1x4x1x1xf32> to vector<1x4x1x16xf32>
    %20 = arith.mulf %19, %12 : vector<1x4x1x16xf32>
    %21 = vector.shape_cast %8 : vector<4x1x1xf32> to vector<1x4x1x1xf32>
    %22 = arith.mulf %21, %14 : vector<1x4x1x1xf32>
    %23 = vector.broadcast %22 : vector<1x4x1x1xf32> to vector<1x4x1x16xf32>
    %24 = arith.addf %20, %23 : vector<1x4x1x16xf32>
    %25 = vector.shape_cast %2 : vector<4x1x1xf32> to vector<1x4x1x1xf32>
    %26 = vector.broadcast %25 : vector<1x4x1x1xf32> to vector<1x4x16x16xf32>
    %27 = arith.mulf %26, %0 : vector<1x4x16x16xf32>
    %28 = vector.broadcast %17 : vector<1x4x16x1xf32> to vector<1x4x16x16xf32>
    %29 = arith.addf %27, %28 : vector<1x4x16x16xf32>
    %30 = vector.broadcast %24 : vector<1x4x1x16xf32> to vector<1x4x16x16xf32>
    %31 = arith.addf %29, %30 : vector<1x4x16x16xf32>
    %c0_18 = arith.constant 0 : index
    %c0_19 = arith.constant 0 : index
    %c0_20 = arith.constant 0 : index
    %c0_21 = arith.constant 0 : index
    %32 = vector.load %arg4[%c0_18, %c0_19, %c0_20, %c0_21] : memref<1x4x16x16xf32, #tpu.memory_space<vmem>>, vector<1x4x16x16xf32>
    tpu.vector_store %arg4[%c0_18, %c0_19, %c0_20, %c0_21], %31 {strides = array<i32>} : memref<1x4x16x16xf32, #tpu.memory_space<vmem>>, vector<1x4x16x16xf32>,
    return
  }
  func.func @transform_0(%arg0: i32, %arg1: i32) -> (i32, i32, i32, i32) {
    %c0_i32 = arith.constant 0 : i32
    %c0_i32_0 = arith.constant 0 : i32
    %c0_i32_1 = arith.constant 0 : i32
    return %arg0, %arg1, %c0_i32, %c0_i32_0 : i32, i32, i32, i32
  }
  func.func @transform_1(%arg0: i32, %arg1: i32) -> (i32, i32, i32, i32) {
    %c0_i32 = arith.constant 0 : i32
    %c0_i32_0 = arith.constant 0 : i32
    %c0_i32_1 = arith.constant 0 : i32
    %c0_i32_2 = arith.constant 0 : i32
    return %c0_i32, %arg1, %c0_i32_0, %c0_i32_1 : i32, i32, i32, i32
  }
  func.func @transform_2(%arg0: i32, %arg1: i32) -> (i32, i32, i32, i32) {
    %c0_i32 = arith.constant 0 : i32
    %c0_i32_0 = arith.constant 0 : i32
    %c0_i32_1 = arith.constant 0 : i32
    return %arg0, %arg1, %c0_i32, %c0_i32_0 : i32, i32, i32, i32
  }
}

</mosaic_0001>

<bundles_post_ra>
// kernel: tpu_custom_call.1
= control target key start
LH: loop header
LB: loop body
LE: loop exit
PB: predicated region body
PF: predicated region fallthrough
CT: control target
= control target key end

     0   :  { %7 = vsyncpa [#allocation3], 0  ;;  %s1215_s0 = inlined_call_operand.hbm [shape: f32[2,4,16,16], index: 0, kind: input, shape index: {}]   ;;  %s1216_s1 = inlined_call_operand.vmem [shape: f32[4,4,1,1], index: 1, kind: input, shape index: {}]   ;;  %s1217_s2 = inlined_call_operand.hbm [shape: f32[2,4,16,16], index: 2, kind: output, shape index: {}]  }
   0x1   :  { %9 = vsyncpa [#allocation3 + $0x1], 0 }
   0x2   :  { %10 = vsyncpa [#allocation4], 0 }
   0x3   :  { %12 = vsyncpa [#allocation4 + $0x1], 0  ;;  %s893_s9 = smov 0   ;;  %s895_s10 = smov 0  }
   0x4   :  { %s897_s11 = smov 0   ;;  %s899_s12 = smov 0  }
   0x5   :  { %s901_s13 = smov 0   ;;  %s903_s14 = smov 0  }
   0x6 LB: > { %s650_s15 = sadd.s32 4294967295, %s869_s14   ;;  %s651_s16 = sadd.s32 4294967294, %s869_s14   ;;  %s869_s14 = sphi %s903_s14, %s18_s14   ;;  %s865_s13 = sphi %s901_s13, %s1232_s13   ;;  %s861_s12 = sphi %s899_s12, %s1231_s12   ;;  %s857_s11 = sphi %s897_s11, %s1230_s11   ;;  %s853_s10 = sphi %s895_s10, %s1229_s10   ;;  %s849_s9 = sphi %s893_s9, %s1228_s9  }
   0x7   : > { %s30_s17 = sadd.s32 1, %s865_s13  ;;  %s39_s18 = sadd.s32 1, %s857_s11 }
   0x8   : > { %p32_p0 = scmp.ge.s32.totalorder %s30_s17, 2  ;;  %p46_p1 = scmp.ne.s32.totalorder %s857_s11, %s853_s10 }
   0x9   : > { %p47_p2 = scmp.eq.s32.totalorder %s869_s14, 0  ;;  %p52_p3 = scmp.ne.s32.totalorder %s853_s10, %s849_s9 }
   0xa   : > { %s1234_s17 = smov (%p32_p0, %s30_s17), 0  ;;  %p53_p5 = scmp.eq.s32.totalorder %s650_s15, 0 }
   0xb   : > { %p934_p4 = por %p47_p2, %p46_p1  ;;  %s34_s20 = ssub.s32 %s865_s13, %s1234_s17 }
   0xc   : > { %p104_p6 = scmp.eq.s32.totalorder %s650_s15, 1  ;;  %p37_p7 = scmp.eq.s32.totalorder %s34_s20, 0 }
   0xd   : > { %p940_p8 = por %p53_p5, %p52_p3  ;;  %p110_p10 = scmp.eq.s32.totalorder %s651_s16, 1 }
   0xe   : > { %p944_p9 = por %p104_p6, %p46_p1  ;;  %p700_p13 = scmp.lt.s32.totalorder %s869_s14, 2 }
   0xf   : > { %s949_s23 = scalar_select %p37_p7, %s857_s11, %s39_s18  }
  0x10   : > { %s1221_s22 = scalar_select %p944_p9, 1, 0 }
  0x11   : > { %p951_p11 = por %p110_p10, %p52_p3  ;;  %s138_s25 = sand.u32 1, %s857_s11  }
  0x12   : > { %s655_s26 = sshll.u32 %s138_s25, 6  ;;  %s686_s27 = sshll.u32 %s865_s13, 10 }
  0x13   : > { %s1222_s24 = scalar_select %p951_p11, 1, 0 }
  0x14   : > { %s962_s30 = scalar_lea.hbm %s1215_s0, %s686_s27  ;;  %s142_s3 = scalar_lea.vmem [#allocation2], %s655_s26 }
  0x15   : > { %s152_s4 = sshll.u32 %s142_s3, 4  ;;  %p968_p0 = pnand %p700_p13, %p934_p4  ;;  %s964_s4 = int_to_ptr.vmem [resolvable:$true] %s152_s4 }
  0x16   : > { %s973_s6 = scalar_lea.sflag [#allocation3], %s138_s25  ;;  %s757_s7 = scalar_lea.hbm %s962_s30, 1024 }
  0x17   : > { %p758_p2 = scmp.ne.s32.totalorder %s962_s30, %s757_s7  ;;  %p759_p3 = pneg %p968_p0 }
  0x18   : > { %s762_s16 = scalar_lea.hbm %s1215_s0, 2048  ;;  %p763_p4 = scmp.lt.u32.totalorder %s962_s30, %s1215_s0 }
  0x19   : > { %p760_p5 = pnand %p759_p3, %p758_p2  ;;  %p764_p7 = scmp.lt.u32.totalorder %s762_s16, %s757_s7 }
  0x1a   : > { %p766_p13 = scmp.lt.u32.totalorder %s757_s7, %s962_s30 }
  0x1b   : > { %p761_p6 = pneg %p760_p5  ;;  %p765_p10 = por %p764_p7, %p763_p4 }
  0x1d   : > { %p767_p12 = por %p766_p13, %p765_p10 }
  0x1f   : > { %p768_p1 = pnand %p767_p12, %p761_p6 }
  0x21   : > { %771 = shalt.err (!%p768_p1)
}
  0x22   : > { %s772_s20 = scalar_lea.vmem %s964_s4, 1024  ;;  %s871_s25 = smov [#allocation2]  }
  0x23   : > { %p773_p2 = scmp.ne.s32.totalorder %s964_s4, %s772_s20  ;;  %s777_s26 = sshll.u32 %s871_s25, 4  ;;  %s778_s26 = int_to_ptr.vmem [resolvable:$false] %s777_s26 }
  0x24   : > { %s779_s27 = scalar_lea.vmem %s778_s26, 2048  ;;  %p780_p9 = scmp.lt.s32.totalorder %s964_s4, %s778_s26 }
  0x25   : > { %p775_p5 = pnand %p773_p2, %p759_p3  ;;  %p781_p4 = scmp.lt.s32.totalorder %s779_s27, %s772_s20 }
  0x27   : > { %p776_p11 = pneg %p775_p5  ;;  %p782_p7 = por %p781_p4, %p780_p9 }
  0x29   : > { %p783_p10 = pnand %p782_p7, %p776_p11 }
  0x2b   : > { %786 = shalt.err (!%p783_p10)
}
  0x2c   : > { %s872_s28 = smov 128   ;;  %s873_s29 = smov 8  }
  0x2d   : > { %695 = dma.hbm_to_vmem [thread:$0]  (!%p968_p0), %s962_s30, 1024, %s964_s4, %s973_s6, %s872_s28, %s872_s28, %s873_s29  }
  0x2e   : > { %p160_p12 = scmp.lt.s32.totalorder %s869_s14, 3  ;;  %p1224_p1 = scmp.ge.s32.totalorder %s869_s14, 1 }
  0x30   : > { %p161_p3 = pnand %p1224_p1, %p160_p12 }
  0x31   : > { %s1005_s3 = sand.u32 (!%p161_p3), 1, %s853_s10  }
  0x32   : > { %164 = sbr.rel (%p161_p3) target bundleno = 385 (0x181), region = 28  ;;  %s659_s7 = sshll.u32 (!%p161_p3), %s1005_s3, 6 }
  0x33   : > { %s167_s8 = scalar_lea.sflag (!%p161_p3), [#allocation3], %s1005_s3  ;;  %s170_s15 = scalar_lea.vmem (!%p161_p3), [#allocation2], %s659_s7 }
  0x39   : > { %840 = dma.done.wait (%p940_p8), %s167_s8, 1024  }
  0x3a   : > { %842 = vsyncadd (%p940_p8), %s167_s8, 4294966272  ;;  %v874_v0 = vmov 0   ;;  %vm229_vm0 = vcmask 130048   ;;  %v1015_v1 = vld [vmem:[%s170_s15 + $0x10] sm:$0xff]  ;;  %v1017_v2 = vld [vmem:[%s170_s15] sm:$0xff]  ;;  %s1131_s21 = scalar_lea.vmem [#allocation5], %s659_s7 }
  0x3b   : > { %756 = vset.pattern.permute.xlu1 %v874_v0  ;;  %755 = vset.pattern.permute.xlu0 %v874_v0  ;;  %v1019_v3 = vld [vmem:[%s170_s15 + $0x18] sm:$0xff]  ;;  %v236_v4 = vsel %vm229_vm0, %v1015_v1, 0.0  ;;  %v230_v5 = vsel %vm229_vm0, %v1017_v2, 0.0  ;;  %v1027_v7 = vld [vmem:[%s170_s15 + $0x8] sm:$0xff]  ;;  %v1031_v9 = vld [vmem:[%s170_s15 + $0x20] sm:$0xff]  ;;  %s687_s7 = sshll.u32 %s861_s12, 10 }
  0x3c   : > { %v239_v6 = vsel %vm229_vm0, %v1019_v3, 0.0  ;;  %v1029_v8 = vld [vmem:[%s170_s15 + $0x28] sm:$0xff]  ;;  %237 = vadd.xlane.f32.xlu1 %v236_v4  ;;  %231 = vadd.xlane.f32.xlu0 %v230_v5  ;;  %v233_v11 = vsel %vm229_vm0, %v1027_v7, 0.0  ;;  %v242_v13 = vsel %vm229_vm0, %v1031_v9, 0.0  ;;  %v1041_v14 = vld [vmem:[%s170_s15 + $0x38] sm:$0xff]  ;;  %v1043_v15 = vld [vmem:[%s170_s15 + $0x30] sm:$0xff]  ;;  %s1160_s6 = scalar_lea.hbm %s1217_s2, %s687_s7 }
  0x3d   : > { %v1033_v10 = vadd.f32 %v239_v6, %v236_v4  ;;  %v245_v12 = vsel %vm229_vm0, %v1029_v8, 0.0  ;;  %v1045_v16 = vadd.f32 %v233_v11, %v230_v5  ;;  %v251_v18 = vsel %vm229_vm0, %v1041_v14, 0.0  ;;  %v666_v21 = vld [vmem:[%s1216_s1 + $0x9] sm:$0x1]  ;;  %v667_v22 = vld [vmem:[%s1216_s1 + $0xa] sm:$0x1] }
  0x3e   : > { %v1047_v17 = vadd.f32 %v245_v12, %v242_v13  ;;  %v248_v19 = vsel %vm229_vm0, %v1043_v15, 0.0  ;;  %v665_v23 = vld [vmem:[%s1216_s1 + $0x8] sm:$0x1]  ;;  %v668_v24 = vld [vmem:[%s1216_s1 + $0xb] sm:$0x1]  ;;  %s551_s30 = sshll.u32 %s1131_s21, 4  ;;  %s1162_s30 = int_to_ptr.vmem [resolvable:$true] %s551_s30 }
  0x3f   : > { %v1053_v20 = vadd.f32 %v251_v18, %v248_v19  ;;  %v678_v25 = vld [vmem:[%s1216_s1 + $0x1] ss:$0 sm:$0xff]  ;;  %v677_v26 = vld [vmem:[%s1216_s1] ss:$0 sm:$0xff]  ;;  %v680_v27 = vld [vmem:[%s1216_s1 + $0x3] ss:$0 sm:$0xff] }
  0x40   : > { %240 = vadd.xlane.f32.xlu1 %v239_v6  ;;  %234 = vadd.xlane.f32.xlu0 %v233_v11  ;;  %v679_v28 = vld [vmem:[%s1216_s1 + $0x2] ss:$0 sm:$0xff]  ;;  %v673_v29 = vld [vmem:[%s1216_s1 + $0x4] ss:$0 sm:$0xff]  ;;  %v674_v30 = vld [vmem:[%s1216_s1 + $0x5] ss:$0 sm:$0xff] }
  0x41   : > { %v675_v43 = vld [vmem:[%s1216_s1 + $0x6] ss:$0 sm:$0xff]  ;;  %v676_v54 = vld [vmem:[%s1216_s1 + $0x7] ss:$0 sm:$0xff]  ;;  %v669_v5 = vld [vmem:[%s1216_s1 + $0xc] sm:$0x1] }
  0x42   : > { %s535_s12 = scalar_lea.sflag [#allocation4], %s1005_s3  ;;  %s787_s16 = scalar_lea.vmem %s1162_s30, 1024 }
  0x43   : > { %p788_p8 = scmp.ne.s32.totalorder %s1162_s30, %s787_s16  ;;  %p1225_p9 = scmp.ne.s32.totalorder %s1221_s22, 0 }
  0x44   : > { %246 = vadd.xlane.f32.xlu1 %v245_v12  ;;  %243 = vadd.xlane.f32.xlu0 %v242_v13  ;;  %s875_s18 = smov [#allocation5]  }
  0x45   : > { %p789_p11 = pnand %p788_p8, %p1225_p9  ;;  %s791_s19 = sshll.u32 %s875_s18, 4  ;;  %s792_s19 = int_to_ptr.vmem [resolvable:$false] %s791_s19 }
  0x46   : > { %s793_s20 = scalar_lea.vmem %s792_s19, 2048  ;;  %p794_p6 = scmp.lt.s32.totalorder %s1162_s30, %s792_s19 }
  0x47   : > { %p790_p0 = pneg %p789_p11  ;;  %p795_p13 = scmp.lt.s32.totalorder %s793_s20, %s787_s16 }
  0x48   : > { %252 = vadd.xlane.f32.xlu1 %v251_v18  ;;  %249 = vadd.xlane.f32.xlu0 %v248_v19 }
  0x49   : > { %p796_p2 = por %p795_p13, %p794_p6 }
  0x4b   : > { %p797_p5 = pnand %p796_p2, %p790_p0 }
  0x59   : > { %353 = vperm.xlu1 %756, %v666_v21  }
  0x5d   : > { %362 = vperm.xlu1 %756, %v667_v22   ;;  %v670_v22 = vld [vmem:[%s1216_s1 + $0xd] sm:$0x1] }
  0x5e   : > { %344 = vperm.xlu0 %755, %v665_v23  }
  0x61   : > { %371 = vperm.xlu1 %756, %v668_v24  }
  0x62   : > { %451 = vperm.xlu0 %755, %v678_v25  }
  0x65   : > { %447 = vperm.xlu1 %756, %v677_v26  }
  0x66   : > { %459 = vperm.xlu0 %755, %v680_v27   ;;  %v671_v27 = vld [vmem:[%s1216_s1 + $0xe] sm:$0x1] }
  0x69   : > { %455 = vperm.xlu1 %756, %v679_v28  }
  0xc9   : > { %v238_v31 = vpop.xlane.xlu1 %237  ;;  %v232_v32 = vpop.xlane.xlu0 %231 }
  0xca   : > { %v334_v33 = vmul.f32 %v673_v29, %v232_v32  ;;  %v336_v34 = vmul.f32 %v674_v30, %v238_v31 }
  0xcc   : > { %472 = vperm.xlu1 %756, %v334_v33  }
  0xcd   : > { %v241_v35 = vpop.xlane.xlu1 %240  ;;  %v235_v36 = vpop.xlane.xlu0 %234 }
  0xce   : > { %v289_v37 = vadd.f32 %v241_v35, %v238_v31  ;;  %v282_v38 = vadd.f32 %v235_v36, %v232_v32  ;;  %v335_v39 = vmul.f32 %v673_v29, %v235_v36  ;;  %v337_v41 = vmul.f32 %v674_v30, %v241_v35  ;;  %v672_v30 = vld [vmem:[%s1216_s1 + $0xf] sm:$0x1] }
  0xd0   : > { %v290_v40 = vrot.slane %v289_v37, 4  ;;  %v283_v42 = vrot.slane %v282_v38, 4  ;;  %482 = vperm.xlu1 %756, %v336_v34   ;;  %477 = vperm.xlu0 %755, %v335_v39   ;;  %v262_v39 = vrot.slane %v1033_v10, 4 }
  0xd1   : > { %v247_v44 = vpop.xlane.xlu1 %246  ;;  %v244_v45 = vpop.xlane.xlu0 %243 }
  0xd2   : > { %v291_v46 = vadd.f32 %v290_v40, %v289_v37  ;;  %v284_v47 = vadd.f32 %v283_v42, %v282_v38  ;;  %v296_v48 = vadd.f32 %v247_v44, %v244_v45  ;;  %v338_v49 = vmul.f32 %v675_v43, %v244_v45 }
  0xd3   : > { %v339_v52 = vmul.f32 %v675_v43, %v247_v44  ;;  %v255_v38 = vrot.slane %v1045_v16, 4  ;;  %v263_v43 = vadd.f32 %v262_v39, %v1033_v10  ;;  %v269_v44 = vrot.slane %v1047_v17, 4 }
  0xd4   : > { %v292_v50 = vrot.slane %v291_v46, 2  ;;  %v285_v51 = vrot.slane %v284_v47, 2  ;;  %v297_v53 = vrot.slane %v296_v48, 4  ;;  %487 = vperm.xlu0 %755, %v337_v41   ;;  %492 = vperm.xlu1 %756, %v338_v49  }
  0xd5   : > { %v253_v55 = vpop.xlane.xlu1 %252  ;;  %v250_v56 = vpop.xlane.xlu0 %249  ;;  %v256_v41 = vadd.f32 %v255_v38, %v1045_v16  ;;  %v270_v49 = vadd.f32 %v269_v44, %v1047_v17 }
  0xd6   : > { %v293_v57 = vadd.f32 %v292_v50, %v291_v46  ;;  %v286_v58 = vadd.f32 %v285_v51, %v284_v47  ;;  %v298_v59 = vadd.f32 %v297_v53, %v296_v48  ;;  %v303_v60 = vadd.f32 %v253_v55, %v250_v56 }
  0xd7   : > { %v341_v0 = vmul.f32 %v676_v54, %v253_v55  ;;  %v340_v32 = vmul.f32 %v676_v54, %v250_v56  ;;  %v257_v46 = vrot.slane %v256_v41, 2  ;;  %v347_v47 = vlaneseq }
  0xd8   : > { %v294_v61 = vrot.slane %v293_v57, 1  ;;  %v287_v62 = vrot.slane %v286_v58, 1  ;;  %v299_v63 = vrot.slane %v298_v59, 2  ;;  %497 = vperm.xlu0 %755, %v339_v52   ;;  %v304_v4 = vrot.slane %v303_v60, 4 }
  0xd9   : > { %v354_v33 = vpop.permute.xlu1 %353  ;;  %v264_v48 = vrot.slane %v263_v43, 2  ;;  %v276_v50 = vrot.slane %v1053_v20, 4  ;;  %v258_v52 = vadd.f32 %v257_v46, %v256_v41  ;;  %v348_v54 = vshrl.u32 %v347_v47, 7 }
  0xda   : > { %v300_v6 = vadd.f32 %v299_v63, %v298_v59  ;;  %v288_v11 = vadd.f32 %v287_v62, %v286_v58  ;;  %v305_v12 = vadd.f32 %v304_v4, %v303_v60  ;;  %v295_v19 = vadd.f32 %v294_v61, %v293_v57 }
  0xdb   : > { %v265_v55 = vadd.f32 %v264_v48, %v263_v43  ;;  %v271_v16 = vrot.slane %v270_v49, 2  ;;  %v277_v56 = vadd.f32 %v276_v50, %v1053_v20  ;;  %v259_v10 = vrot.slane %v258_v52, 1 }
  0xdc   : > { %v301_v13 = vrot.slane %v300_v6, 1  ;;  %507 = vperm.xlu0 %755, %v341_v0   ;;  %v382_v18 = vmul.f32 %v669_v5, %v288_v11  ;;  %v306_v21 = vrot.slane %v305_v12, 2  ;;  %v383_v24 = vmul.f32 %v670_v22, %v295_v19 }
  0xdd   : > { %v1103_v34 = vpop.permute.xlu1 %362  ;;  %v345_v37 = vpop.permute.xlu0 %344  ;;  %v1117_v58 = vsub.s32 0, %v348_v54  ;;  %v272_v59 = vadd.f32 %v271_v16, %v270_v49  ;;  %v278_v60 = vrot.slane %v277_v56, 2  ;;  %v266_v61 = vrot.slane %v265_v55, 1 }
  0xde   : > { %388 = vperm.xlu1 %756, %v382_v18   ;;  %v307_v23 = vadd.f32 %v306_v21, %v305_v12  ;;  %v302_v25 = vadd.f32 %v301_v13, %v300_v6  ;;  %v260_v17 = vadd.f32 %v259_v10, %v258_v52 }
  0xdf   : > { %v350_v63 = vrot.slane %v345_v37, %v1117_v58  ;;  %v279_v0 = vadd.f32 %v278_v60, %v277_v56  ;;  %v267_v4 = vadd.f32 %v266_v61, %v265_v55  ;;  %v359_v5 = vrot.slane %v354_v33, %v1117_v58 }
  0xe0   : > { %v308_v26 = vrot.slane %v307_v23, 1  ;;  %v384_v28 = vmul.f32 %v671_v27, %v302_v25  ;;  %v273_v6 = vrot.slane %v272_v59, 1  ;;  %v368_v27 = vrot.slane %v1103_v34, %v1117_v58 }
  0xe1   : > { %v1105_v35 = vpop.permute.xlu1 %371  ;;  %v452_v42 = vpop.permute.xlu0 %451  ;;  %v378_v18 = vmul.f32 %v350_v63, %v260_v17 }
  0xe2   : > { %397 = vperm.xlu1 %756, %v383_v24   ;;  %v309_v29 = vadd.f32 %v308_v26, %v307_v23  ;;  %v464_v21 = vmul.f32 %v452_v42, %v1015_v1  ;;  %v465_v22 = vmul.f32 %v452_v42, %v1019_v3  ;;  %v274_v26 = vadd.f32 %v273_v6, %v272_v59 }
  0xe3   : > { %v377_v37 = vrot.slane %v1105_v35, %v1117_v58 }
  0xe4   : > { %v385_v31 = vmul.f32 %v672_v30, %v309_v29  ;;  %v380_v34 = vmul.f32 %v368_v27, %v274_v26 }
  0xe5   : > { %v448_v36 = vpop.permute.xlu1 %447  ;;  %v1114_v51 = vpop.permute.xlu0 %459 }
  0xe6   : > { %406 = vperm.xlu1 %756, %v384_v28   ;;  %v462_v20 = vmul.f32 %v448_v36, %v1017_v2  ;;  %v463_v13 = vmul.f32 %v448_v36, %v1027_v7  ;;  %v280_v28 = vrot.slane %v279_v0, 1  ;;  %v379_v2 = vmul.f32 %v359_v5, %v267_v4 }
  0xe7   : > { %v468_v52 = vmul.f32 %v1114_v51, %v1043_v15 }
  0xe8   : > { %v281_v36 = vadd.f32 %v280_v28, %v279_v0 }
  0xe9   : > { %v456_v40 = vpop.permute.xlu1 %455 }
  0xea   : > { %415 = vperm.xlu1 %756, %v385_v31   ;;  %v466_v38 = vmul.f32 %v456_v40, %v1031_v9  ;;  %v467_v41 = vmul.f32 %v456_v40, %v1029_v8  ;;  %v381_v47 = vmul.f32 %v377_v37, %v281_v36  ;;  %v469_v8 = vmul.f32 %v1114_v51, %v1041_v14 }
  0xee   : > { %502 = vperm.xlu1 %756, %v340_v32  }
 0x14b   : > { %v473_v45 = vpop.permute.xlu1 %472 }
 0x14c   : > { %v510_v23 = vadd.f32 %v473_v45, %v462_v20 }
 0x14f   : > { %v483_v53 = vpop.permute.xlu1 %482  ;;  %v478_v57 = vpop.permute.xlu0 %477 }
 0x150   : > { %v511_v24 = vadd.f32 %v478_v57, %v463_v13  ;;  %v512_v33 = vadd.f32 %v483_v53, %v464_v21 }
 0x153   : > { %v493_v62 = vpop.permute.xlu1 %492  ;;  %v488_v11 = vpop.permute.xlu0 %487 }
 0x154   : > { %v513_v1 = vadd.f32 %v488_v11, %v465_v22  ;;  %v514_v45 = vadd.f32 %v493_v62, %v466_v38 }
 0x157   : > { %v498_v32 = vpop.permute.xlu0 %497 }
 0x158   : > { %v515_v46 = vadd.f32 %v498_v32, %v467_v41 }
 0x15b   : > { %v508_v9 = vpop.permute.xlu0 %507 }
 0x15c   : > { %v517_v53 = vadd.f32 %v508_v9, %v469_v8 }
 0x15d   : > { %v389_v12 = vpop.permute.xlu1 %388 }
 0x15e   : > { %v394_v19 = vrot.slane %v389_v12, %v1117_v58 }
 0x160   : > { %v422_v25 = vadd.f32 %v394_v19, %v378_v18 }
 0x161   : > { %v398_v29 = vpop.permute.xlu1 %397 }
 0x162   : > { %v518_v30 = vadd.f32 %v510_v23, %v422_v25  ;;  %v519_v7 = vadd.f32 %v511_v24, %v422_v25  ;;  %v403_v31 = vrot.slane %v398_v29, %v1117_v58 }
 0x164   : > { %526 = vst.msk [vmem:[%s1131_s21] sm:$0xff] %vm229_vm0, %v518_v30  ;;  %527 = vst.msk [vmem:[%s1131_s21 + $0x8] sm:$0xff] %vm229_vm0, %v519_v7  ;;  %v423_v3 = vadd.f32 %v403_v31, %v379_v2 }
 0x165   : > { %v407_v39 = vpop.permute.xlu1 %406 }
 0x166   : > { %v520_v42 = vadd.f32 %v512_v33, %v423_v3  ;;  %v521_v43 = vadd.f32 %v513_v1, %v423_v3  ;;  %v412_v44 = vrot.slane %v407_v39, %v1117_v58 }
 0x168   : > { %528 = vst.msk [vmem:[%s1131_s21 + $0x10] sm:$0xff] %vm229_vm0, %v520_v42  ;;  %529 = vst.msk [vmem:[%s1131_s21 + $0x18] sm:$0xff] %vm229_vm0, %v521_v43  ;;  %v424_v35 = vadd.f32 %v412_v44, %v380_v34 }
 0x169   : > { %v416_v48 = vpop.permute.xlu1 %415 }
 0x16a   : > { %v522_v40 = vadd.f32 %v514_v45, %v424_v35  ;;  %v523_v49 = vadd.f32 %v515_v46, %v424_v35  ;;  %v421_v50 = vrot.slane %v416_v48, %v1117_v58 }
 0x16c   : > { %530 = vst.msk [vmem:[%s1131_s21 + $0x20] sm:$0xff] %vm229_vm0, %v522_v40  ;;  %531 = vst.msk [vmem:[%s1131_s21 + $0x28] sm:$0xff] %vm229_vm0, %v523_v49  ;;  %v425_v54 = vadd.f32 %v421_v50, %v381_v47 }
 0x16d   : > { %v503_v14 = vpop.permute.xlu1 %502 }
 0x16e   : > { %v525_v55 = vadd.f32 %v517_v53, %v425_v54  ;;  %v516_v16 = vadd.f32 %v503_v14, %v468_v52 }
 0x170   : > { %533 = vst.msk [vmem:[%s1131_s21 + $0x38] sm:$0xff] %vm229_vm0, %v525_v55  ;;  %v524_v15 = vadd.f32 %v516_v16, %v425_v54 }
 0x172   : > { %532 = vst.msk [vmem:[%s1131_s21 + $0x30] sm:$0xff] %vm229_vm0, %v524_v15 }
 0x173   : > { %800 = shalt.err (!%p797_p5)
}
 0x174   : > { %s801_s25 = scalar_lea.hbm %s1160_s6, 1024  ;;  %s805_s28 = scalar_lea.hbm %s1217_s2, 2048 }
 0x175   : > { %p802_p4 = scmp.ne.s32.totalorder %s1160_s6, %s801_s25  ;;  %p806_p12 = scmp.lt.u32.totalorder %s1160_s6, %s1217_s2 }
 0x176   : > { %p807_p1 = scmp.lt.u32.totalorder %s805_s28, %s801_s25  ;;  %p809_p8 = scmp.lt.u32.totalorder %s801_s25, %s1160_s6 }
 0x177   : > { %p803_p7 = pnand %p802_p4, %p1225_p9 }
 0x178   : > { %p808_p3 = por %p807_p1, %p806_p12 }
 0x179   : > { %p804_p10 = pneg %p803_p7 }
 0x17a   : > { %p810_p11 = por %p809_p8, %p808_p3 }
 0x17c   : > { %p811_p0 = pnand %p810_p11, %p804_p10 }
 0x17e   : > { %814 = shalt.err (!%p811_p0)
}
 0x17f   : > { %s876_s15 = smov 128   ;;  %s877_s21 = smov 8  }
 0x180   : > { %690 = dma.vmem_to_hbm [thread:$0]  (%p1225_p9), %s1162_s30, 1024, %s1160_s6, %s535_s12, %s876_s15, %s876_s15, %s877_s21  }
 0x181 PF: > { %s566_s7 = sand.u32 1, %s849_s9   ;;  %p1226_p6 = scmp.ne.s32.totalorder %s1222_s24, 0 }
 0x182   : > { %p1227_p13 = scmp.ge.s32.totalorder %s869_s14, 2  ;;  %s567_s4 = scalar_lea.sflag [#allocation4], %s566_s7 }
 0x184   : > { %p697_p2 = pnand %p1227_p13, %p1226_p6 }
 0x186   : > { %844 = dma.done.wait (!%p697_p2), %s567_s4, 1024  }
 0x187   : > { %846 = vsyncadd (!%p697_p2), %s567_s4, 4294966272  ;;  %s18_s14 = sadd.s32 1, %s869_s14   ;;  %s1228_s9 = smov %s853_s10 }
 0x188   : > { %p15_p5 = scmp.ge.s32.totalorder %s18_s14, 4   ;;  %s1229_s10 = smov %s857_s11 }
 0x189   : > { %s1230_s11 = smov %s949_s23  ;;  %s1231_s12 = smov %s865_s13 }
 0x18a   : > { %s1232_s13 = smov %s1234_s17  ;;  %17 = sbr.rel (!%p15_p5) target bundleno = 6 (0x6), region = 79 }
 0x191   :  { %572 = vsyncpa [#allocation3], 1 }
 0x192   :  { %574 = vsyncpa [#allocation3 + $0x1], 1 }
 0x193   :  { %575 = vsyncpa [#allocation4], 1 }
 0x194   :  { %577 = vsyncpa [#allocation4 + $0x1], 1 }

</bundles_post_ra>
